<compile_context>
chip_gen: v7x
topology: tpu7x:2x2x1
jax: 0.10.0
libtpu: 0.0.40
codegen_flags: <defaults>
</compile_context>

<pallas_src>
import functools
from typing import NamedTuple

import jax
import jax.numpy as jnp
from jax.experimental import pallas as pl
from jax.experimental.pallas import tpu as pltpu


def _round_up(x: int, m: int) -> int:
    return (x + m - 1) // m * m


class DecoderDims(NamedTuple):
    """Static sizes needed by the kernel (hashable -> usable as a jit static arg)."""
    E: int        # action-embedding size
    F: int        # visual-feature size
    H: int        # LSTM hidden size
    A_out: int    # output action vocabulary


def _weight_slab_layout(E: int, F: int, H: int):
    """Row offsets inside the packed weight slab (see prepare_attn_decoder_params)."""
    K = E + F + H                       # contraction dim of the fused gate matmul
    r_bg = K                            # row holding (b_ih + b_hh)
    r_bd = K + 1                        # row holding b_dec
    r_sm = _round_up(K + 2, 8)          # small-weights block, sublane aligned
    n_rows = _round_up(r_sm + H, 8)
    return K, r_bg, r_bd, r_sm, n_rows


def _attn_decoder_kernel(w_ref, act_ref, ctx_ref, out_ref, *,
                         E, F, H, S, A_out, out_w):
    """One fused decoder step, everything VMEM resident.

    w_ref   : (n_rows, >=4H) packed weights/biases
    act_ref : (B, act_w)     [a_emb | feature | h_0 | c_0 | mask_bias | pad]
    ctx_ref : (B, S, H)      encoder context
    out_ref : (B, out_w)     [h_1 | c_1 | alpha | logit | pad]
    """
    K = E + F + H
    r_bg = K
    r_bd = K + 1
    r_sm = _round_up(K + 2, 8)
    B = act_ref.shape[0]

    x = act_ref[:, 0:K]                          # [a_emb | feature | h_0]
    c0 = act_ref[:, K:K + H]
    mask_bias = act_ref[:, K + H:K + H + S]      # 0 where valid, -1e30 where masked

    # ---- LSTMCell: one fused K=(E+F+H) MXU pass (PyTorch gate order i, f, g, o) ----
    gates = (jnp.dot(x, w_ref[0:K, 0:4 * H], preferred_element_type=jnp.float32)
             + w_ref[r_bg:r_bg + 1, 0:4 * H])

    sg = jax.nn.sigmoid(gates)                   # full-vreg nonlinearities, slice once
    tg = jnp.tanh(gates)
    i_g = sg[:, 0 * H:1 * H]
    f_g = sg[:, 1 * H:2 * H]
    g_g = tg[:, 2 * H:3 * H]
    o_g = sg[:, 3 * H:4 * H]

    c1 = f_g * c0 + i_g * g_g
    h1 = o_g * jnp.tanh(c1)

    # ---- SoftDotAttention (dropout on h1 is identity in eval mode) ----
    # Fused h1 projections: [linear_in | h-part of linear_out] in one K=H matmul.
    th = jnp.dot(h1, w_ref[r_sm:r_sm + H, 0:2 * H],
                 preferred_element_type=jnp.float32)            # (B, 2H)
    target = th[:, 0:H]
    h1_out = th[:, H:2 * H]

    ctx = ctx_ref[...]                                           # (B, S, H)
    # Keep score / wctx reductions on VPU multiply + XLU reduce (batched MXU passes
    # would badly under-fill at these sizes -- per the review, leave as-is).
    scores = jnp.sum(ctx * target[:, None, :], axis=-1) + mask_bias     # (B, S)

    m = jnp.max(scores, axis=-1, keepdims=True)
    e = jnp.exp(scores - m)
    denom = jnp.sum(e, axis=-1, keepdims=True)
    inv = pl.reciprocal(denom, approx=True)       # EUP path, off the VPU chain
    inv = inv * (2.0 - denom * inv)               # one Newton step -> f32-accurate
    alpha = e * inv                                              # (B, S)

    wctx = jnp.sum(alpha[:, :, None] * ctx, axis=1)              # (B, H)

    h_tilde = jnp.tanh(
        jnp.dot(wctx, w_ref[r_sm:r_sm + H, 2 * H:3 * H],
                preferred_element_type=jnp.float32) + h1_out)
    logit = (jnp.dot(h_tilde, w_ref[r_sm:r_sm + H, 3 * H:3 * H + A_out],
                     preferred_element_type=jnp.float32)
             + w_ref[r_bd:r_bd + 1, 0:A_out])

    # ---- pack the 4 results into one lane-dense (B, 128) output slab (1 DMA) ----
    used = 2 * H + S + A_out
    out_ref[:, 0:H] = h1
    out_ref[:, H:2 * H] = c1
    out_ref[:, 2 * H:2 * H + S] = alpha
    out_ref[:, 2 * H + S:used] = logit
    if out_w > used:
        out_ref[:, used:out_w] = jnp.zeros((B, out_w - used), jnp.float32)


def prepare_attn_decoder_params(params):
    """One-time (per decode sequence) weight packing, hoisted off the per-step path.

    Slab layout (f32, lane width = max(4H, 3H+A_out) rounded to 128):
      rows 0:K           [W_ih ; W_hh]^T            (K = E+F+H, lanes 0:4H)
      row  K             b_ih + b_hh                (lanes 0:4H)
      row  K+1           b_dec                      (lanes 0:A_out)
      rows r_sm:r_sm+H   [W_in^T | W_out_h^T | W_out_ctx^T | W_dec^T]
    """
    emb = params["embedding"].astype(jnp.float32)
    w_ih = params["w_ih"].astype(jnp.float32)        # (4H, E+F)
    w_hh = params["w_hh"].astype(jnp.float32)        # (4H, H)

    E = emb.shape[1]
    H = w_hh.shape[1]
    F = w_ih.shape[1] - E
    A_out = params["w_dec"].shape[0]

    K, r_bg, r_bd, r_sm, n_rows = _weight_slab_layout(E, F, H)
    n_lanes = _round_up(max(4 * H, 3 * H + A_out), 128)

    w_gates = jnp.concatenate([w_ih, w_hh], axis=1).T                      # (K, 4H)
    b_gates = (params["b_ih"] + params["b_hh"]).astype(jnp.float32)        # (4H,)
    w_small = jnp.concatenate(
        [params["w_in"].T,            # linear_in            (H, H) -> target
         params["w_out"][:, H:].T,    # linear_out, h part   (H, H)
         params["w_out"][:, :H].T,    # linear_out, ctx part (H, H)
         params["w_dec"].T],          # decoder2action       (H, A_out)
        axis=1).astype(jnp.float32)                                        # (H, 3H+A_out)

    slab = jnp.zeros((n_rows, n_lanes), jnp.float32)
    slab = slab.at[0:K, 0:4 * H].set(w_gates)
    slab = slab.at[r_bg, 0:4 * H].set(b_gates)
    slab = slab.at[r_bd, 0:A_out].set(params["b_dec"].astype(jnp.float32))
    slab = slab.at[r_sm:r_sm + H, 0:3 * H + A_out].set(w_small)

    # TODO(synk): cast slab/ctx to bf16 on v6e/v7x (halves weight DMA bytes); kept f32
    # so the same code stays exact on v5e (no bf16 VPU/EUP there).
    packed = {"w_slab": slab, "embedding": emb}
    dims = DecoderDims(E=E, F=F, H=H, A_out=A_out)
    return packed, dims


# TODO(synk): fusing T decode steps into one pallas_call (grid=(T,), weights resident in
# VMEM, h/c carried in scratch) is not possible for this module's semantics: action and
# feature at step t come from the environment / sampling on the previous logit, outside
# the module. Per-step cost is instead minimized by the one-time packing above and the
# 4-DMA (3 in + 1 out) lane-dense layout.
def attn_decoder_step(packed, dims, action, feature, h_0, c_0, ctx, ctx_mask=None):
    """One AttnDecoderLSTM step (same semantics as the PyTorch module.forward).

    action: (B,1) int32, feature: (B,F), h_0/c_0: (B,H), ctx: (B,S,H),
    ctx_mask: (B,S) bool (True = masked). Returns (h_1, c_1, alpha, logit).
    """
    E, F, H, A_out = dims
    B = feature.shape[0]
    S = ctx.shape[1]
    K, _, _, _, _ = _weight_slab_layout(E, F, H)

    act_used = K + H + S
    act_w = _round_up(act_used, 128)
    out_used = 2 * H + S + A_out
    out_w = _round_up(out_used, 128)

    # TODO(synk): nn.Dropout is identity here (eval mode); no train-mode dropout mask.
    a_emb = jnp.take(packed["embedding"], action.reshape(-1), axis=0)       # (B, E)
    if ctx_mask is not None:
        mask_bias = jnp.where(ctx_mask, -1e30, 0.0).astype(jnp.float32)     # additive
    else:
        mask_bias = jnp.zeros((B, S), jnp.float32)

    pieces = [a_emb.astype(jnp.float32), feature.astype(jnp.float32),
              h_0.astype(jnp.float32), c_0.astype(jnp.float32), mask_bias]
    if act_w > act_used:
        pieces.append(jnp.zeros((B, act_w - act_used), jnp.float32))
    act_slab = jnp.concatenate(pieces, axis=1)                              # (B, act_w)

    kernel = functools.partial(_attn_decoder_kernel, E=E, F=F, H=H, S=S,
                               A_out=A_out, out_w=out_w)
    vmem = pl.BlockSpec(memory_space=pltpu.MemorySpace.VMEM)

    out = pl.pallas_call(
        kernel,
        out_shape=jax.ShapeDtypeStruct((B, out_w), jnp.float32),
        in_specs=[vmem, vmem, vmem],
        out_specs=vmem,
    )(packed["w_slab"], act_slab, ctx.astype(jnp.float32))

    h1 = out[:, 0:H]
    c1 = out[:, H:2 * H]
    alpha = out[:, 2 * H:2 * H + S]
    logit = out[:, 2 * H + S:out_used]
    return h1, c1, alpha, logit


def _reference_forward(action, feature, h_0, c_0, ctx, ctx_mask, params):
    """Pure-JAX reference of the same PyTorch semantics."""
    H = h_0.shape[1]
    a_emb = jnp.take(params["embedding"], action.reshape(-1), axis=0)
    x = jnp.concatenate([a_emb, feature], axis=1)
    gates = (x @ params["w_ih"].T + params["b_ih"]
             + h_0 @ params["w_hh"].T + params["b_hh"])
    i = jax.nn.sigmoid(gates[:, 0 * H:1 * H])
    f = jax.nn.sigmoid(gates[:, 1 * H:2 * H])
    g = jnp.tanh(gates[:, 2 * H:3 * H])
    o = jax.nn.sigmoid(gates[:, 3 * H:4 * H])
    c1 = f * c_0 + i * g
    h1 = o * jnp.tanh(c1)

    target = h1 @ params["w_in"].T                                # (B, H)
    attn = jnp.einsum('bsh,bh->bs', ctx, target)                  # (B, S)
    attn = jnp.where(ctx_mask, -jnp.inf, attn)
    alpha = jax.nn.softmax(attn, axis=1)
    wctx = jnp.einsum('bs,bsh->bh', alpha, ctx)                   # (B, H)
    h_tilde = jnp.tanh(jnp.concatenate([wctx, h1], axis=1) @ params["w_out"].T)
    logit = h_tilde @ params["w_dec"].T + params["b_dec"]
    return h1, c1, alpha, logit


if __name__ == "__main__":
    # Small shapes consistent with the module (bias-free attention linears, LSTMCell).
    B, S = 8, 8
    E, H, F = 32, 32, 64            # embedding, hidden, feature sizes
    A_IN, A_OUT = 10, 16            # input/output action vocab

    key = jax.random.PRNGKey(0)
    ks = jax.random.split(key, 12)

    params = {
        "embedding": jax.random.normal(ks[0], (A_IN, E), jnp.float32) * 0.1,
        "w_ih": jax.random.normal(ks[1], (4 * H, E + F), jnp.float32) * 0.1,
        "w_hh": jax.random.normal(ks[2], (4 * H, H), jnp.float32) * 0.1,
        "b_ih": jax.random.normal(ks[3], (4 * H,), jnp.float32) * 0.1,
        "b_hh": jax.random.normal(ks[4], (4 * H,), jnp.float32) * 0.1,
        "w_in": jax.random.normal(ks[5], (H, H), jnp.float32) * 0.1,          # linear_in (no bias)
        "w_out": jax.random.normal(ks[6], (H, 2 * H), jnp.float32) * 0.1,     # linear_out (no bias)
        "w_dec": jax.random.normal(ks[7], (A_OUT, H), jnp.float32) * 0.1,     # decoder2action
        "b_dec": jax.random.normal(ks[8], (A_OUT,), jnp.float32) * 0.1,
    }

    action = jax.random.randint(ks[9], (B, 1), 0, A_IN, dtype=jnp.int32)
    feature = jax.random.normal(ks[10], (B, F), jnp.float32)
    h_0 = jax.random.normal(ks[11], (B, H), jnp.float32) * 0.1
    c_0 = jax.random.normal(jax.random.PRNGKey(1), (B, H), jnp.float32) * 0.1
    ctx = jax.random.normal(jax.random.PRNGKey(2), (B, S, H), jnp.float32) * 0.1

    # ctx_mask: True = masked; keep the first few positions valid in every row.
    lens = jnp.array([8, 8, 7, 6, 5, 4, 3, 2], dtype=jnp.int32)
    ctx_mask = jnp.arange(S)[None, :] >= lens[:, None]            # (B, S) bool

    # One-time packing (hoisted out of the per-step decode path), then a jitted step.
    packed, dims = prepare_attn_decoder_params(params)
    step = jax.jit(attn_decoder_step, static_argnums=(1,))

    h1, c1, alpha, logit = step(packed, dims, action, feature, h_0, c_0, ctx, ctx_mask)
    jax.block_until_ready((h1, c1, alpha, logit))

    h1_r, c1_r, a_r, l_r = _reference_forward(action, feature, h_0, c_0, ctx,
                                              ctx_mask, params)
    assert jnp.allclose(h1, h1_r, atol=1e-4), "h_1 mismatch"
    assert jnp.allclose(c1, c1_r, atol=1e-4), "c_1 mismatch"
    assert jnp.allclose(alpha, a_r, atol=1e-4), "alpha mismatch"
    assert jnp.allclose(logit, l_r, atol=1e-4), "logit mismatch"

    print("KERNEL_OK")
</pallas_src>

<mosaic_0001>
module attributes {stable_mosaic.version = 11 : i64} {
  func.func @_attn_decoder_kernel(%arg0: memref<168x128xf32, #tpu.memory_space<vmem>>, %arg1: memref<8x256xf32, #tpu.memory_space<vmem>>, %arg2: memref<8x8x32xf32, #tpu.memory_space<vmem>>, %arg3: memref<8x128xf32, #tpu.memory_space<vmem>>) attributes {dimension_semantics = [], scalar_prefetch = 0 : i64, scratch_operands = 0 : i64, tpu.core_type = #tpu.core_type<tc>} {
    %c0 = arith.constant 0 : index
    %c0_0 = arith.constant 0 : index
    %0 = vector.load %arg1[%c0, %c0_0] : memref<8x256xf32, #tpu.memory_space<vmem>>, vector<8x128xf32>
    %c0_1 = arith.constant 0 : index
    %c128 = arith.constant 128 : index
    %1 = vector.load %arg1[%c0_1, %c128] : memref<8x256xf32, #tpu.memory_space<vmem>>, vector<8x32xf32>
    %c0_2 = arith.constant 0 : index
    %c160 = arith.constant 160 : index
    %2 = vector.load %arg1[%c0_2, %c160] : memref<8x256xf32, #tpu.memory_space<vmem>>, vector<8x8xf32>
    %c0_3 = arith.constant 0 : index
    %c0_4 = arith.constant 0 : index
    %3 = vector.load %arg0[%c0_3, %c0_4] : memref<168x128xf32, #tpu.memory_space<vmem>>, vector<128x128xf32>
    %cst = arith.constant dense<0.000000e+00> : vector<8x128xf32>
    %4 = tpu.matmul %0, %3, %cst {dimension_numbers = #tpu.dot_dimension_numbers<[1], [0], [0], [1], [0, 0, 1, 1], [], []>} : vector<8x128xf32>, vector<128x128xf32>, vector<8x128xf32> -> vector<8x128xf32>
    %c128_5 = arith.constant 128 : index
    %c0_6 = arith.constant 0 : index
    %5 = vector.load %arg0[%c128_5, %c0_6] : memref<168x128xf32, #tpu.memory_space<vmem>>, vector<1x128xf32>
    %6 = vector.broadcast %5 : vector<1x128xf32> to vector<8x128xf32>
    %7 = arith.addf %4, %6 : vector<8x128xf32>
    %8 = arith.negf %7 : vector<8x128xf32>
    %9 = math.exp %8 : vector<8x128xf32>
    %cst_7 = arith.constant 1.000000e+00 : f32
    %10 = vector.broadcast %cst_7 : f32 to vector<8x128xf32>
    %11 = arith.addf %10, %9 : vector<8x128xf32>
    %12 = arith.divf %10, %11 : vector<8x128xf32>
    %13 = math.tanh %7 : vector<8x128xf32>
    %14 = vector.extract_strided_slice %12 {offsets = [0, 0], sizes = [8, 32], strides = [1, 1]} : vector<8x128xf32> to vector<8x32xf32>
    %15 = vector.extract_strided_slice %12 {offsets = [0, 32], sizes = [8, 32], strides = [1, 1]} : vector<8x128xf32> to vector<8x32xf32>
    %16 = vector.extract_strided_slice %13 {offsets = [0, 64], sizes = [8, 32], strides = [1, 1]} : vector<8x128xf32> to vector<8x32xf32>
    %17 = vector.extract_strided_slice %12 {offsets = [0, 96], sizes = [8, 32], strides = [1, 1]} : vector<8x128xf32> to vector<8x32xf32>
    %18 = arith.mulf %15, %1 : vector<8x32xf32>
    %19 = arith.mulf %14, %16 : vector<8x32xf32>
    %20 = arith.addf %18, %19 : vector<8x32xf32>
    %21 = math.tanh %20 : vector<8x32xf32>
    %22 = arith.mulf %17, %21 : vector<8x32xf32>
    %c136 = arith.constant 136 : index
    %c0_8 = arith.constant 0 : index
    %23 = vector.load %arg0[%c136, %c0_8] : memref<168x128xf32, #tpu.memory_space<vmem>>, vector<32x64xf32>
    %cst_9 = arith.constant dense<0.000000e+00> : vector<8x64xf32>
    %24 = tpu.matmul %22, %23, %cst_9 {dimension_numbers = #tpu.dot_dimension_numbers<[1], [0], [0], [1], [0, 0, 1, 1], [], []>} : vector<8x32xf32>, vector<32x64xf32>, vector<8x64xf32> -> vector<8x64xf32>
    %25 = vector.extract_strided_slice %24 {offsets = [0, 0], sizes = [8, 32], strides = [1, 1]} : vector<8x64xf32> to vector<8x32xf32>
    %26 = vector.extract_strided_slice %24 {offsets = [0, 32], sizes = [8, 32], strides = [1, 1]} : vector<8x64xf32> to vector<8x32xf32>
    %c0_10 = arith.constant 0 : index
    %c0_11 = arith.constant 0 : index
    %c0_12 = arith.constant 0 : index
    %27 = vector.load %arg2[%c0_10, %c0_11, %c0_12] : memref<8x8x32xf32, #tpu.memory_space<vmem>>, vector<8x8x32xf32>
    %28 = vector.shape_cast %25 : vector<8x32xf32> to vector<8x1x32xf32>
    %29 = vector.broadcast %28 : vector<8x1x32xf32> to vector<8x8x32xf32>
    %30 = arith.mulf %27, %29 : vector<8x8x32xf32>
    %cst_13 = arith.constant dense<0.000000e+00> : vector<8x8xf32>
    %31 = vector.multi_reduction <add>, %30, %cst_13 [2] : vector<8x8x32xf32> to vector<8x8xf32>
    %32 = arith.addf %31, %2 : vector<8x8xf32>
    %cst_14 = arith.constant dense<0xFF800000> : vector<8xf32>
    %33 = vector.multi_reduction <maximumf>, %32, %cst_14 [1] : vector<8x8xf32> to vector<8xf32>
    %34 = vector.shape_cast %33 : vector<8xf32> to vector<8x1xf32>
    %35 = vector.broadcast %34 : vector<8x1xf32> to vector<8x8xf32>
    %36 = arith.subf %32, %35 : vector<8x8xf32>
    %37 = math.exp %36 : vector<8x8xf32>
    %cst_15 = arith.constant dense<0.000000e+00> : vector<8xf32>
    %38 = vector.multi_reduction <add>, %37, %cst_15 [1] : vector<8x8xf32> to vector<8xf32>
    %39 = vector.shape_cast %38 : vector<8xf32> to vector<8x1xf32>
    %40 = tpu.reciprocal %39 {approx = true} : vector<8x1xf32> -> vector<8x1xf32>
    %41 = arith.mulf %39, %40 : vector<8x1xf32>
    %cst_16 = arith.constant 2.000000e+00 : f32
    %42 = vector.broadcast %cst_16 : f32 to vector<8x1xf32>
    %43 = arith.subf %42, %41 : vector<8x1xf32>
    %44 = arith.mulf %40, %43 : vector<8x1xf32>
    %45 = vector.broadcast %44 : vector<8x1xf32> to vector<8x8xf32>
    %46 = arith.mulf %37, %45 : vector<8x8xf32>
    %47 = vector.shape_cast %46 : vector<8x8xf32> to vector<8x8x1xf32>
    %48 = vector.broadcast %47 : vector<8x8x1xf32> to vector<8x8x32xf32>
    %49 = arith.mulf %48, %27 : vector<8x8x32xf32>
    %cst_17 = arith.constant dense<0.000000e+00> : vector<8x32xf32>
    %50 = vector.multi_reduction <add>, %49, %cst_17 [1] : vector<8x8x32xf32> to vector<8x32xf32>
    %c136_18 = arith.constant 136 : index
    %c64 = arith.constant 64 : index
    %51 = vector.load %arg0[%c136_18, %c64] : memref<168x128xf32, #tpu.memory_space<vmem>>, vector<32x32xf32>
    %cst_19 = arith.constant dense<0.000000e+00> : vector<8x32xf32>
    %52 = tpu.matmul %50, %51, %cst_19 {dimension_numbers = #tpu.dot_dimension_numbers<[1], [0], [0], [1], [0, 0, 1, 1], [], []>} : vector<8x32xf32>, vector<32x32xf32>, vector<8x32xf32> -> vector<8x32xf32>
    %53 = arith.addf %52, %26 : vector<8x32xf32>
    %54 = math.tanh %53 : vector<8x32xf32>
    %c136_20 = arith.constant 136 : index
    %c96 = arith.constant 96 : index
    %55 = vector.load %arg0[%c136_20, %c96] : memref<168x128xf32, #tpu.memory_space<vmem>>, vector<32x16xf32>
    %cst_21 = arith.constant dense<0.000000e+00> : vector<8x16xf32>
    %56 = tpu.matmul %54, %55, %cst_21 {dimension_numbers = #tpu.dot_dimension_numbers<[1], [0], [0], [1], [0, 0, 1, 1], [], []>} : vector<8x32xf32>, vector<32x16xf32>, vector<8x16xf32> -> vector<8x16xf32>
    %c129 = arith.constant 129 : index
    %c0_22 = arith.constant 0 : index
    %57 = vector.load %arg0[%c129, %c0_22] : memref<168x128xf32, #tpu.memory_space<vmem>>, vector<1x16xf32>
    %58 = vector.broadcast %57 : vector<1x16xf32> to vector<8x16xf32>
    %59 = arith.addf %56, %58 : vector<8x16xf32>
    %c0_23 = arith.constant 0 : index
    %c0_24 = arith.constant 0 : index
    %60 = vector.load %arg3[%c0_23, %c0_24] : memref<8x128xf32, #tpu.memory_space<vmem>>, vector<8x32xf32>
    tpu.vector_store %arg3[%c0_23, %c0_24], %22 {strides = array<i32>} : memref<8x128xf32, #tpu.memory_space<vmem>>, vector<8x32xf32>,
    %c0_25 = arith.constant 0 : index
    %c32 = arith.constant 32 : index
    %61 = vector.load %arg3[%c0_25, %c32] : memref<8x128xf32, #tpu.memory_space<vmem>>, vector<8x32xf32>
    tpu.vector_store %arg3[%c0_25, %c32], %20 {strides = array<i32>} : memref<8x128xf32, #tpu.memory_space<vmem>>, vector<8x32xf32>,
    %c0_26 = arith.constant 0 : index
    %c64_27 = arith.constant 64 : index
    %62 = vector.load %arg3[%c0_26, %c64_27] : memref<8x128xf32, #tpu.memory_space<vmem>>, vector<8x8xf32>
    tpu.vector_store %arg3[%c0_26, %c64_27], %46 {strides = array<i32>} : memref<8x128xf32, #tpu.memory_space<vmem>>, vector<8x8xf32>,
    %c0_28 = arith.constant 0 : index
    %c72 = arith.constant 72 : index
    %63 = vector.load %arg3[%c0_28, %c72] : memref<8x128xf32, #tpu.memory_space<vmem>>, vector<8x16xf32>
    tpu.vector_store %arg3[%c0_28, %c72], %59 {strides = array<i32>} : memref<8x128xf32, #tpu.memory_space<vmem>>, vector<8x16xf32>,
    %cst_29 = arith.constant 0.000000e+00 : f32
    %64 = vector.broadcast %cst_29 : f32 to vector<8x40xf32>
    %c0_30 = arith.constant 0 : index
    %c88 = arith.constant 88 : index
    %65 = vector.load %arg3[%c0_30, %c88] : memref<8x128xf32, #tpu.memory_space<vmem>>, vector<8x40xf32>
    tpu.vector_store %arg3[%c0_30, %c88], %64 {strides = array<i32>} : memref<8x128xf32, #tpu.memory_space<vmem>>, vector<8x40xf32>,
    return
  }
}

</mosaic_0001>

<bundles_post_ra>
// kernel: attn_decoder_step.1
= control target key start
LH: loop header
LB: loop body
LE: loop exit
PB: predicated region body
PF: predicated region fallthrough
CT: control target
= control target key end

     0   :  { %8 = vsyncpa [#allocation3], 0  ;;  %s1316_s12 = smov [#allocation2]   ;;  %s1708_s0 = inlined_call_operand.vmem [shape: f32[168,128], index: 0, kind: input, shape index: {}]   ;;  %s1709_s1 = inlined_call_operand.vmem [shape: f32[8,256], index: 1, kind: input, shape index: {}]   ;;  %s1710_s2 = inlined_call_operand.hbm [shape: f32[8,8,32], index: 2, kind: input, shape index: {}]   ;;  %s1711_s3 = inlined_call_operand.vmem [shape: f32[8,128], index: 3, kind: output, shape index: {}]  }
   0x1   :  { %s18_s13 = sshll.u32 %s1316_s12, 4  ;;  %s1292_s16 = scalar_lea.hbm %s1710_s2, 1024  ;;  %s19_s13 = int_to_ptr.vmem [resolvable:$true] %s18_s13 }
   0x2   :  { %p1293_p0 = scmp.ne.s32.totalorder %s1710_s2, %s1292_s16  ;;  %p1296_p1 = scmp.lt.u32.totalorder %s1292_s16, %s1710_s2 }
   0x4   :  { %p1298_p2 = pnand %p1296_p1, %p1293_p0 }
   0x6   :  { %1301 = shalt.err (!%p1298_p2)
}
   0x7   :  { %s1302_s21 = scalar_lea.vmem %s19_s13, 1024  ;;  %p1307_p4 = scmp.lt.s32.totalorder %s19_s13, %s19_s13 }
   0x8   :  { %p1303_p3 = scmp.ne.s32.totalorder %s19_s13, %s1302_s21  ;;  %p1308_p5 = scmp.lt.s32.totalorder %s1302_s21, %s1302_s21 }
   0xa   :  { %p1309_p6 = por %p1308_p5, %p1307_p4 }
   0xc   :  { %p1310_p7 = pnand %p1309_p6, %p1303_p3 }
   0xe   :  { %1313 = shalt.err (!%p1310_p7)
}
   0xf   :  { %s1317_s22 = smov 128   ;;  %s1318_s23 = smov 8  }
  0x10   :  { %24 = dma.hbm_to_vmem [thread:$0]  %s1710_s2, 1024, %s19_s13, [#allocation3], %s1317_s22, %s1317_s22, %s1318_s23  }
  0x11   :  { %1314 = dma.done.wait [#allocation3], 1024  }
  0x12   :  { %1315 = vsyncadd [#allocation3], 4294966272  ;;  %v1319_v0 = vmov 0.0|0.0   ;;  %vm1320_vm0 = vmmov 0   ;;  %v1321_v1 = vmov 0.0   ;;  %v30_v2 = vld [vmem:[%s1708_s0] sm:$0xff]  ;;  %v242_v50 = vlaneseq }
  0x13   :  { %1188 = vmatprep.subr.bf16.mxu0 %v1319_v0  ;;  %1152 = vmatprep.mubr.msk.f32.mxu0 %vm1320_vm0, %v1321_v1  ;;  %v31_v3 = vld [vmem:[%s1708_s0 + $0x8] sm:$0xff]  ;;  %v32_v4 = vld [vmem:[%s1708_s0 + $0x10] sm:$0xff]  ;;  %v33_v6 = vld [vmem:[%s1708_s0 + $0x18] sm:$0xff]  ;;  %s1322_s6 = smov 64   ;;  %s1323_s9 = smov 32   ;;  %vm156_vm1 = vcmask 261120  }
  0x14   :  { %1212 = vmatprep.subr.bf16.mxu1 %v1319_v0  ;;  %1163 = vmatprep.mubr.msk.f32.mxu1 %vm1320_vm0, %v1321_v1  ;;  %v1189_v5 = vpack.c.bf16 %v31_v3, %v30_v2  ;;  %v1192_v7 = vpack.c.bf16 %v33_v6, %v32_v4  ;;  %v34_v8 = vld [vmem:[%s1708_s0 + $0x20] sm:$0xff]  ;;  %v35_v9 = vld [vmem:[%s1708_s0 + $0x28] sm:$0xff]  ;;  %v36_v11 = vld [vmem:[%s1708_s0 + $0x30] sm:$0xff]  ;;  %v1464_v51 = vshrl.u32 %v242_v50, 7  ;;  %vm1024_vm2 = vcmask 523520   ;;  %s1326_s21 = smov 96  }
  0x15   :  { %v1195_v10 = vpack.c.bf16 %v35_v9, %v34_v8  ;;  %v37_v12 = vld [vmem:[%s1708_s0 + $0x38] sm:$0xff]  ;;  %v38_v14 = vld [vmem:[%s1708_s0 + $0x40] sm:$0xff]  ;;  %v39_v15 = vld [vmem:[%s1708_s0 + $0x48] sm:$0xff]  ;;  %vm505_vm3 = vcmask 1041409   ;;  %vm507_vm4 = vcmask 1042434   ;;  %vm509_vm5 = vcmask 1043459  }
  0x16   :  { %1190 = vmatpush3.bf16.msra.mxu0 %v1189_v5  ;;  %v1198_v13 = vpack.c.bf16 %v37_v12, %v36_v11  ;;  %v1201_v16 = vpack.c.bf16 %v39_v15, %v38_v14  ;;  %v40_v17 = vld [vmem:[%s1708_s0 + $0x50] sm:$0xff]  ;;  %v41_v18 = vld [vmem:[%s1708_s0 + $0x58] sm:$0xff]  ;;  %v42_v20 = vld [vmem:[%s1708_s0 + $0x60] sm:$0xff]  ;;  %v1467_v52 = vsub.s32 1, %v1464_v51  ;;  %v1470_v53 = vsub.s32 2, %v1464_v51  ;;  %s1327_s26 = smov 72  }
  0x17   :  { %1191 = vmatprep.subr.bf16.mxu0 %v1319_v0  ;;  %v1204_v19 = vpack.c.bf16 %v41_v18, %v40_v17  ;;  %v43_v21 = vld [vmem:[%s1708_s0 + $0x68] sm:$0xff]  ;;  %v44_v23 = vld [vmem:[%s1708_s0 + $0x70] sm:$0xff]  ;;  %v45_v24 = vld [vmem:[%s1708_s0 + $0x78] sm:$0xff]  ;;  %v1477_v56 = vsub.s32 0, %v1464_v51  ;;  %v1480_v57 = vsub.s32 4, %v1464_v51  ;;  %v1488_v62 = vsub.s32 3, %v1464_v51 }
  0x18   :  { %v1207_v22 = vpack.c.bf16 %v43_v21, %v42_v20  ;;  %v1210_v25 = vpack.c.bf16 %v45_v24, %v44_v23  ;;  %v28_v26 = vld [vmem:[%s1709_s1] sm:$0xff]  ;;  %v1431_v32 = vld [vmem:[%s1709_s1 + $0x8] sm:$0xff]  ;;  %v1444_v44 = vld [vmem:[%s1708_s0 + $0x90] sm:$0xff]  ;;  %v1493_v2 = vsub.s32 5, %v1464_v51  ;;  %v1324_v5 = vmov 1966171168  }
  0x19   :  { %v1082_v27 = vld [vmem:[%s1708_s0 + $0x80] ss:$0 sm:$0xff]  ;;  %v1439_v43 = vld [vmem:[%s1708_s0 + $0x88] sm:$0xff]  ;;  %v1449_v45 = vld [vmem:[%s1708_s0 + $0x98] sm:$0xff]  ;;  %v370_v54 = vrot.slane %v1431_v32, %v1467_v52  ;;  %v378_v55 = vrot.slane %v1431_v32, %v1470_v53  ;;  %v362_v60 = vrot.slane %v1431_v32, %v1477_v56  ;;  %v394_v61 = vrot.slane %v1431_v32, %v1480_v57 }
  0x1a   :  { %1193 = vmatpush3.bf16.msra.mxu0 %v1192_v7  ;;  %v1213_v46 = vpack.c.bf16 %v1444_v44, %v1439_v43  ;;  %v1456_v47 = vld [vmem:[%s1708_s0 + $0xa0] sm:$0xff]  ;;  %v386_v63 = vrot.slane %v1431_v32, %v1488_v62  ;;  %v402_v3 = vrot.slane %v1431_v32, %v1493_v2  ;;  %v240_v6 = vunpack.c.l.s4 %v1324_v5  ;;  %v1516_v21 = vld [vmem:[#allocation2 + $0x8] sm:$0xff] }
  0x1b   :  { %1194 = vmatprep.subr.bf16.mxu0 %v1319_v0  ;;  %v1216_v48 = vpack.c.bf16 %v1456_v47, %v1449_v45  ;;  %vm511_vm6 = vcmask 1044484   ;;  %vm513_vm7 = vcmask 1045509   ;;  %vm515_vm8 = vcmask 1046534  }
  0x1c   :  { %1214 = vmatpush3.bf16.msra.mxu1 %v1213_v46  ;;  %v241_v7 = vunpack.c.0.s8 %v240_v6  ;;  %vm517_vm9 = vcmask 1047559   ;;  %vm520_vm10 = vcmask 64512   ;;  %vm1067_vm11 = vcmask 589312  }
  0x1d   :  { %1215 = vmatprep.subr.bf16.mxu1 %v1319_v0  ;;  %vm1073_vm12 = vcmask 720448   ;;  %vm1075_vm13 = vcmask 1048256  }
  0x1e   :  { %1196 = vmatpush3.bf16.msra.mxu0 %v1195_v10  ;;  %v244_v8 = vsub.s32 %v241_v7, %v1464_v51  ;;  %v1325_v7 = vmov 0  }
  0x1f   :  { %1197 = vmatprep.subr.bf16.mxu0 %v1319_v0  ;;  %1242 = vset.pattern.permute.xlu1 %v1325_v7 }
  0x20   :  { %1217 = vmatpush3.bf16.msra.mxu1 %v1216_v48  ;;  %1243 = vset.pattern.permute.xlu0 %v1325_v7 }
  0x21   :  { %1218 = vmatprep.subr.bf16.mxu1 %v1319_v0 }
  0x22   :  { %1199 = vmatpush3.bf16.msra.mxu0 %v1198_v13 }
  0x23   :  { %1200 = vmatprep.subr.bf16.mxu0 %v1319_v0 }
  0x26   :  { %1202 = vmatpush3.bf16.msra.mxu0 %v1201_v16  ;;  %v1513_v16 = vld [vmem:[#allocation2] sm:$0xff] }
  0x27   :  { %1203 = vmatprep.subr.bf16.mxu0 %v1319_v0 }
  0x2a   :  { %1205 = vmatpush3.bf16.msra.mxu0 %v1204_v19 }
  0x2b   :  { %1206 = vmatprep.subr.bf16.mxu0 %v1319_v0 }
  0x2e   :  { %1208 = vmatpush3.bf16.msra.mxu0 %v1207_v22 }
  0x2f   :  { %1209 = vmatprep.subr.bf16.mxu0 %v1319_v0 }
  0x32   :  { %1211 = vmatpush3.bf16.msra.mxu0 %v1210_v25 }
  0x35   :  { %1153 = vmatmul.mubr.f32.vlgmr.msra.gmra.mrb[0].mxu0 %v28_v26 }
 0x108   :  { %v117_v28 = vpop.f32.mrb[0].mxu0 }
 0x109   :  { %v118_v29 = vadd.f32 %v1082_v27, %v117_v28  ;;  %v1154_v30 = vpop.f32.mrb[1].mxu0  ;;  %v1521_v27 = vld [vmem:[#allocation2 + $0x18] sm:$0xff]  ;;  %v1523_v28 = vld [vmem:[#allocation2 + $0x10] sm:$0xff] }
 0x10b   :  { %1264 = vtanh.f32 %v118_v29  ;;  %v1083_v33 = vmul.f32 -1.442695, %v118_v29 }
 0x10d   :  { %1266 = vpow2.f32 %v1083_v33 }
 0x115   :  { %v1265_v31 = vpop.eup %1264 }
 0x116   :  { %134 = vrot.lane.b32.xlu0 %v1265_v31, %s1322_s6 }
 0x117   :  { %v1267_v34 = vpop.eup %1266 }
 0x118   :  { %v124_v35 = vadd.f32 1.0, %v1267_v34  ;;  %v1528_v34 = vld [vmem:[#allocation2 + $0x28] sm:$0xff] }
 0x11a   :  { %129 = vrot.lane.b32.xlu0 %v1431_v32, %s1323_s9  ;;  %1268 = vrcp.f32 %v124_v35 }
 0x124   :  { %v1269_v36 = vpop.eup %1268 }
 0x188   :  { %v135_v37 = vpop.permute.xlu0 %134 }
 0x189   :  { %v137_v38 = vmul.f32 %v1269_v36, %v135_v37 }
 0x18b   :  { %139 = vrot.lane.b32.xlu1 %v137_v38, %s1323_s9 }
 0x18c   :  { %v130_v39 = vpop.permute.xlu0 %129 }
 0x18d   :  { %v132_v40 = vmul.f32 %v1269_v36, %v130_v39 }
 0x1fd   :  { %v140_v41 = vpop.permute.xlu1 %139 }
 0x1fe   :  { %v142_v42 = vadd.f32 %v140_v41, %v132_v40 }
 0x200   :  { %1270 = vtanh.f32 %v142_v42 }
 0x20a   :  { %v1271_v49 = vpop.eup %1270 }
 0x20b   :  { %145 = vrot.lane.b32.xlu1 %v1271_v49, %s1322_s6 }
 0x20f   :  { %373 = vbcast.lane.b32.xlu1 %v370_v54, 288  ;;  %v1540_v54 = vld [vmem:[#allocation2 + $0x38] sm:$0xff] }
 0x213   :  { %381 = vbcast.lane.b32.xlu1 %v378_v55, 288 }
 0x217   :  { %397 = vbcast.lane.b32.xlu1 %v394_v61, 288 }
 0x27d   :  { %v146_v58 = vpop.permute.xlu1 %145 }
 0x27e   :  { %v148_v59 = vmul.f32 %v1269_v36, %v146_v58 }
 0x280   :  { %154 = vrot.lane.b32.xlu0 %v148_v59, %s1323_s9 }
 0x284   :  { %365 = vbcast.lane.b32.xlu0 %v362_v60, 288  ;;  %v1545_v60 = vld [vmem:[#allocation2 + $0x30] sm:$0xff] }
 0x288   :  { %389 = vbcast.lane.b32.xlu0 %v386_v63, 288 }
 0x28c   :  { %405 = vbcast.lane.b32.xlu0 %v402_v3, 288 }
 0x2f2   :  { %v155_v4 = vpop.permute.xlu0 %154 }
 0x2f3   :  { %1023 = vst.msk [vmem:[%s1711_s3] sm:$0xff] %vm156_vm1, %v155_v4  ;;  %1164 = vmatmul.mubr.msk.f32.vlgmr.msra.gmra.mrb[0].mxu1 %vm156_vm1, %v155_v4 }
 0x2f4   :  { %1025 = vst.msk [vmem:[%s1711_s3] sm:$0xff] %vm1024_vm2, %v142_v42  ;;  %1174 = vmatprep.mubr.msk.f32.mxu1 %vm1320_vm0, %v1321_v1  ;;  %v1535_v42 = vld [vmem:[#allocation2 + $0x20] sm:$0xff] }
 0x3c6   :  { %v1508_v9 = vpop.f32.mrb[0].mxu1 }
 0x3c7   :  { %v238_v10 = vcombine.high %v1508_v9, %v1508_v9  ;;  %v245_v11 = vrot.slane %v1508_v9, %v244_v8  ;;  %v1165_v12 = vpop.f32.mrb[1].mxu1 }
 0x3c9   :  { %v252_v13 = vrot.slane %v238_v10, %v244_v8  ;;  %v253_v14 = vcombine.high %v245_v11, %v245_v11  ;;  %v261_v15 = vrot.slane %v245_v11, %v244_v8  ;;  %v1559_v11 = vsub.s32 7, %v1464_v51 }
 0x3cb   :  { %v254_v17 = vcombine.high %v252_v13, %v252_v13  ;;  %v290_v18 = vrot.slane %v261_v15, %v1477_v56  ;;  %v275_v19 = vrot.slane %v253_v14, %v244_v8  ;;  %v283_v20 = vcombine.high %v261_v15, %v261_v15  ;;  %v366_v14 = vpop.permute.xlu0 %365 }
 0x3cc   :  { %v268_v22 = vrot.slane %v252_v13, %v244_v8  ;;  %v418_v12 = vrot.slane %v1431_v32, %v1559_v11  ;;  %v374_v13 = vpop.permute.xlu1 %373 }
 0x3cd   :  { %v327_v23 = vmul.f32 %v290_v18, %v1513_v16  ;;  %v294_v24 = vrot.slane %v275_v19, %v1477_v56  ;;  %v285_v25 = vcombine.high %v275_v19, %v275_v19  ;;  %v298_v26 = vrot.slane %v283_v20, %v1477_v56 }
 0x3ce   :  { %v282_v29 = vrot.slane %v254_v17, %v244_v8  ;;  %v306_v36 = vrot.slane %v268_v22, %v1477_v56  ;;  %v284_v41 = vcombine.high %v268_v22, %v268_v22  ;;  %v1554_v8 = vsub.s32 6, %v1464_v51 }
 0x3cf   :  { %v335_v30 = vsel %vm156_vm1, %v327_v23, 0.0  ;;  %v328_v31 = vmul.f32 %v294_v24, %v1516_v21  ;;  %v302_v33 = vrot.slane %v285_v25, %v1477_v56  ;;  %v329_v40 = vmul.f32 %v298_v26, %v1523_v28  ;;  %v390_v17 = vpop.permute.xlu0 %389 }
 0x3d0   :  { %336 = vadd.xlane.f32.xlu1 %v335_v30  ;;  %v310_v35 = vrot.slane %v282_v29, %v1477_v56  ;;  %v286_v37 = vcombine.high %v282_v29, %v282_v29  ;;  %v331_v58 = vmul.f32 %v306_v36, %v1535_v42  ;;  %v314_v59 = vrot.slane %v284_v41, %v1477_v56  ;;  %v382_v15 = vpop.permute.xlu1 %381 }
 0x3d1   :  { %v338_v38 = vsel %vm156_vm1, %v328_v31, 0.0  ;;  %v330_v39 = vmul.f32 %v302_v33, %v1521_v27  ;;  %v341_v55 = vsel %vm156_vm1, %v329_v40, 0.0  ;;  %v410_v10 = vrot.slane %v1431_v32, %v1554_v8 }
 0x3d2   :  { %339 = vadd.xlane.f32.xlu0 %v338_v38  ;;  %v332_v48 = vmul.f32 %v310_v35, %v1528_v34  ;;  %v318_v49 = vrot.slane %v286_v37, %v1477_v56  ;;  %v347_v3 = vsel %vm156_vm1, %v331_v58, 0.0  ;;  %v333_v4 = vmul.f32 %v314_v59, %v1545_v60 }
 0x3d3   :  { %v344_v46 = vsel %vm156_vm1, %v330_v39, 0.0  ;;  %v406_v19 = vpop.permute.xlu0 %405 }
 0x3d4   :  { %345 = vadd.xlane.f32.xlu1 %v344_v46  ;;  %v350_v61 = vsel %vm156_vm1, %v332_v48, 0.0  ;;  %v334_v63 = vmul.f32 %v318_v49, %v1540_v54  ;;  %v353_v6 = vsel %vm156_vm1, %v333_v4, 0.0  ;;  %v398_v18 = vpop.permute.xlu1 %397  ;;  %v1582_v46 = vand.u32 127, %v242_v50 }
 0x3d6   :  { %342 = vadd.xlane.f32.xlu0 %v341_v55  ;;  %v356_v5 = vsel %vm156_vm1, %v334_v63, 0.0  ;;  %v1586_v55 = vsub.s32 %v1582_v46, %v1464_v51 }
 0x3d8   :  { %351 = vadd.xlane.f32.xlu1 %v350_v61 }
 0x3da   :  { %348 = vadd.xlane.f32.xlu0 %v347_v3 }
 0x3dc   :  { %357 = vadd.xlane.f32.xlu1 %v356_v5 }
 0x3de   :  { %354 = vadd.xlane.f32.xlu0 %v353_v6 }
 0x3ed   :  { %413 = vbcast.lane.b32.xlu1 %v410_v10, 288 }
 0x3f4   :  { %421 = vbcast.lane.b32.xlu0 %v418_v12, 288 }
 0x45d   :  { %v337_v20 = vpop.xlane.xlu1 %336 }
 0x45e   :  { %v1563_v22 = vadd.f32 %v366_v14, %v337_v20 }
 0x45f   :  { %v340_v23 = vpop.xlane.xlu0 %339 }
 0x460   :  { %v1565_v24 = vadd.f32 %v374_v13, %v340_v23  ;;  %448 = vperm.xlu1 %1242, %v1563_v22  }
 0x461   :  { %v346_v25 = vpop.xlane.xlu1 %345 }
 0x462   :  { %451 = vperm.xlu0 %1243, %v1565_v24   ;;  %v434_v31 = vadd.f32 %v390_v17, %v346_v25 }
 0x463   :  { %v343_v26 = vpop.xlane.xlu0 %342 }
 0x464   :  { %v433_v32 = vadd.f32 %v382_v15, %v343_v26 }
 0x465   :  { %v352_v29 = vpop.xlane.xlu1 %351 }
 0x466   :  { %454 = vperm.xlu1 %1242, %v433_v32   ;;  %v1572_v37 = vadd.f32 %v406_v19, %v352_v29 }
 0x467   :  { %v349_v30 = vpop.xlane.xlu0 %348 }
 0x468   :  { %v1569_v33 = vadd.f32 %v398_v18, %v349_v30 }
 0x469   :  { %v358_v35 = vpop.xlane.xlu1 %357 }
 0x46a   :  { %460 = vperm.xlu0 %1243, %v1569_v33   ;;  %457 = vperm.xlu1 %1242, %v434_v31  }
 0x46b   :  { %v355_v36 = vpop.xlane.xlu0 %354 }
 0x46d   :  { %v414_v38 = vpop.permute.xlu1 %413 }
 0x46e   :  { %v1574_v39 = vadd.f32 %v414_v38, %v355_v36  ;;  %463 = vperm.xlu1 %1242, %v1572_v37  }
 0x46f   :  { %v422_v40 = vpop.permute.xlu0 %421 }
 0x470   :  { %v1577_v41 = vadd.f32 %v422_v40, %v358_v35  ;;  %466 = vperm.xlu0 %1243, %v1574_v39  }
 0x472   :  { %469 = vperm.xlu1 %1242, %v1577_v41  }
 0x4df   :  { %v449_v48 = vpop.permute.xlu1 %448 }
 0x4e0   :  { %v476_v63 = vrot.slane %v449_v48, %v1586_v55 }
 0x4e1   :  { %v452_v49 = vpop.permute.xlu0 %451 }
 0x4e2   :  { %v480_v59 = vrot.slane %v452_v49, %v1586_v55 }
 0x4e4   :  { %v506_v50 = vsel %vm505_vm3, %v480_v59, %v476_v63 }
 0x4e5   :  { %v455_v58 = vpop.permute.xlu1 %454 }
 0x4e6   :  { %v484_v61 = vrot.slane %v455_v58, %v1586_v55 }
 0x4e8   :  { %v508_v6 = vsel %vm507_vm4, %v484_v61, %v506_v50 }
 0x4e9   :  { %v461_v3 = vpop.permute.xlu0 %460  ;;  %v458_v4 = vpop.permute.xlu1 %457 }
 0x4ea   :  { %v488_v5 = vrot.slane %v458_v4, %v1586_v55  ;;  %v492_v7 = vrot.slane %v461_v3, %v1586_v55 }
 0x4ec   :  { %v510_v10 = vsel %vm509_vm5, %v488_v5, %v508_v6 }
 0x4ed   :  { %v464_v12 = vpop.permute.xlu1 %463  ;;  %v512_v14 = vsel %vm511_vm6, %v492_v7, %v510_v10 }
 0x4ee   :  { %v496_v13 = vrot.slane %v464_v12, %v1586_v55 }
 0x4ef   :  { %v467_v15 = vpop.permute.xlu0 %466 }
 0x4f0   :  { %v514_v17 = vsel %vm513_vm7, %v496_v13, %v512_v14  ;;  %v500_v18 = vrot.slane %v467_v15, %v1586_v55 }
 0x4f1   :  { %v470_v19 = vpop.permute.xlu1 %469 }
 0x4f2   :  { %v504_v20 = vrot.slane %v470_v19, %v1586_v55  ;;  %v516_v23 = vsel %vm515_vm8, %v500_v18, %v514_v17 }
 0x4f4   :  { %v518_v25 = vsel %vm517_vm9, %v504_v20, %v516_v23 }
 0x4f5   :  { %v521_v26 = vsel %vm520_vm10, %v518_v25, -inf }
 0x4f6   :  { %522 = vmax.xlane.f32.xlu0 %v521_v26 }
 0x583   :  { %v523_v29 = vpop.xlane.xlu0 %522 }
 0x584   :  { %v528_v30 = vrot.slane %v523_v29, %v1477_v56  ;;  %v532_v35 = vrot.slane %v523_v29, %v1467_v52  ;;  %v536_v36 = vrot.slane %v523_v29, %v1470_v53  ;;  %v540_v49 = vrot.slane %v523_v29, %v1488_v62 }
 0x585   :  { %v544_v61 = vrot.slane %v523_v29, %v1480_v57  ;;  %v548_v4 = vrot.slane %v523_v29, %v1493_v2 }
 0x586   :  { %v565_v38 = vsub.f32 %v1563_v22, %v528_v30  ;;  %v566_v40 = vsub.f32 %v1565_v24, %v532_v35  ;;  %v567_v58 = vsub.f32 %v433_v32, %v536_v36  ;;  %v568_v63 = vsub.f32 %v434_v31, %v540_v49 }
 0x587   :  { %v569_v50 = vsub.f32 %v1569_v33, %v544_v61  ;;  %v552_v24 = vrot.slane %v523_v29, %v1554_v8  ;;  %v570_v32 = vsub.f32 %v1572_v37, %v548_v4  ;;  %v556_v31 = vrot.slane %v523_v29, %v1559_v11 }
 0x588   :  { %v573_v48 = vmul.f32 1.442695, %v565_v38  ;;  %v575_v59 = vmul.f32 1.442695, %v566_v40  ;;  %v577_v3 = vmul.f32 1.442695, %v567_v58 }
 0x589   :  { %v579_v5 = vmul.f32 1.442695, %v568_v63  ;;  %v581_v6 = vmul.f32 1.442695, %v569_v50  ;;  %v571_v10 = vsub.f32 %v1574_v39, %v552_v24  ;;  %v583_v33 = vmul.f32 1.442695, %v570_v32 }
 0x58a   :  { %1272 = vpow2.f32 %v573_v48  ;;  %v572_v13 = vsub.f32 %v1577_v41, %v556_v31 }
 0x58b   :  { %1274 = vpow2.f32 %v575_v59  ;;  %v585_v14 = vmul.f32 1.442695, %v571_v10 }
 0x58c   :  { %1276 = vpow2.f32 %v577_v3  ;;  %v587_v37 = vmul.f32 1.442695, %v572_v13 }
 0x58d   :  { %1278 = vpow2.f32 %v579_v5 }
 0x58e   :  { %1280 = vpow2.f32 %v581_v6 }
 0x58f   :  { %1282 = vpow2.f32 %v583_v33 }
 0x590   :  { %1284 = vpow2.f32 %v585_v14 }
 0x591   :  { %1286 = vpow2.f32 %v587_v37 }
 0x594   :  { %v1613_v22 = vpop.eup %1272 }
 0x595   :  { %598 = vperm.xlu1 %1242, %v1613_v22   ;;  %v1275_v7 = vpop.eup %1274 }
 0x596   :  { %v1277_v12 = vpop.eup %1276 }
 0x597   :  { %v1279_v15 = vpop.eup %1278 }
 0x598   :  { %v1281_v17 = vpop.eup %1280 }
 0x599   :  { %601 = vperm.xlu1 %1242, %v1275_v7   ;;  %v1283_v18 = vpop.eup %1282 }
 0x59a   :  { %v1285_v19 = vpop.eup %1284 }
 0x59b   :  { %v1287_v39 = vpop.eup %1286 }
 0x59d   :  { %604 = vperm.xlu1 %1242, %v1277_v12  }
 0x5a1   :  { %607 = vperm.xlu1 %1242, %v1279_v15  }
 0x5a5   :  { %610 = vperm.xlu1 %1242, %v1281_v17  }
 0x5a9   :  { %613 = vperm.xlu1 %1242, %v1283_v18  }
 0x5ad   :  { %616 = vperm.xlu1 %1242, %v1285_v19  }
 0x5b1   :  { %619 = vperm.xlu1 %1242, %v1287_v39  }
 0x614   :  { %v599_v20 = vpop.permute.xlu1 %598 }
 0x615   :  { %v624_v36 = vrot.slane %v599_v20, %v1586_v55 }
 0x618   :  { %v602_v23 = vpop.permute.xlu1 %601 }
 0x619   :  { %v628_v30 = vrot.slane %v602_v23, %v1586_v55 }
 0x61b   :  { %v653_v49 = vsel %vm505_vm3, %v628_v30, %v624_v36 }
 0x61c   :  { %v605_v25 = vpop.permute.xlu1 %604 }
 0x61d   :  { %v632_v35 = vrot.slane %v605_v25, %v1586_v55 }
 0x61f   :  { %v654_v59 = vsel %vm507_vm4, %v632_v35, %v653_v49 }
 0x620   :  { %v608_v26 = vpop.permute.xlu1 %607 }
 0x621   :  { %v636_v38 = vrot.slane %v608_v26, %v1586_v55  ;;  %v1244_v26 = vpack.i.bf16 %v1444_v44, %v1439_v43 }
 0x623   :  { %v655_v63 = vsel %vm509_vm5, %v636_v38, %v654_v59 }
 0x624   :  { %v611_v41 = vpop.permute.xlu1 %610 }
 0x625   :  { %v640_v40 = vrot.slane %v611_v41, %v1586_v55 }
 0x627   :  { %v656_v3 = vsel %vm511_vm6, %v640_v40, %v655_v63  ;;  %v1026_v40 = vadd.s32 4294967232, %v1582_v46 }
 0x628   :  { %v614_v29 = vpop.permute.xlu1 %613 }
 0x629   :  { %v644_v58 = vrot.slane %v614_v29, %v1586_v55 }
 0x62b   :  { %v657_v50 = vsel %vm513_vm7, %v644_v58, %v656_v3 }
 0x62c   :  { %v617_v48 = vpop.permute.xlu1 %616 }
 0x62d   :  { %v648_v61 = vrot.slane %v617_v48, %v1586_v55 }
 0x62f   :  { %v658_v24 = vsel %vm515_vm8, %v648_v61, %v657_v50  ;;  %v1029_v61 = vsub.s32 %v1026_v40, %v1464_v51 }
 0x630   :  { %v620_v4 = vpop.permute.xlu1 %619 }
 0x631   :  { %v652_v5 = vrot.slane %v620_v4, %v1586_v55 }
 0x633   :  { %v659_v32 = vsel %vm517_vm9, %v652_v5, %v658_v24 }
 0x634   :  { %v661_v6 = vsel %vm520_vm10, %v659_v32, 0.0 }
 0x635   :  { %662 = vadd.xlane.f32.xlu0 %v661_v6 }
 0x6c2   :  { %v663_v31 = vpop.xlane.xlu0 %662 }
 0x6c3   :  { %1288 = vrcp.f32 %v663_v31 }
 0x6cd   :  { %v1289_v10 = vpop.eup %1288 }
 0x6ce   :  { %v665_v33 = vmul.f32 %v1289_v10, %v663_v31 }
 0x6d0   :  { %v666_v13 = vsub.f32 2.0, %v665_v33 }
 0x6d2   :  { %v667_v14 = vmul.f32 %v1289_v10, %v666_v13 }
 0x6d4   :  { %v676_v37 = vrot.slane %v667_v14, %v1467_v52  ;;  %v672_v20 = vrot.slane %v667_v14, %v1477_v56  ;;  %v680_v25 = vrot.slane %v667_v14, %v1470_v53  ;;  %v684_v29 = vrot.slane %v667_v14, %v1488_v62 }
 0x6d5   :  { %v688_v52 = vrot.slane %v667_v14, %v1480_v57  ;;  %v692_v53 = vrot.slane %v667_v14, %v1493_v2  ;;  %v696_v44 = vrot.slane %v667_v14, %v1554_v8  ;;  %v700_v57 = vrot.slane %v667_v14, %v1559_v11 }
 0x6d6   :  { %v710_v23 = vmul.f32 %v1275_v7, %v676_v37  ;;  %v709_v55 = vmul.f32 %v1613_v22, %v672_v20  ;;  %v711_v41 = vmul.f32 %v1277_v12, %v680_v25  ;;  %v712_v30 = vmul.f32 %v1279_v15, %v684_v29 }
 0x6d7   :  { %v713_v56 = vmul.f32 %v1281_v17, %v688_v52  ;;  %v1249_v22 = vpack.i.bf16 %v1456_v47, %v1449_v45  ;;  %v714_v43 = vmul.f32 %v1283_v18, %v692_v53  ;;  %v715_v62 = vmul.f32 %v1285_v19, %v696_v44 }
 0x6d8   :  { %724 = vperm.xlu0 %1243, %v710_v23   ;;  %719 = vperm.xlu1 %1242, %v709_v55   ;;  %v716_v7 = vmul.f32 %v1287_v39, %v700_v57 }
 0x6dc   :  { %1245 = vrot.lane.b32.xlu0 %v1244_v26, %s1322_s6  ;;  %729 = vperm.xlu1 %1242, %v711_v41  }
 0x6e0   :  { %856 = vrot.lane.b32.xlu0 %v1508_v9, %s1326_s21  ;;  %734 = vperm.xlu1 %1242, %v712_v30  }
 0x6e4   :  { %739 = vperm.xlu1 %1242, %v713_v56   ;;  %1260 = vrot.lane.b32.xlu0 %v1249_v22, %s1323_s9 }
 0x6e8   :  { %744 = vperm.xlu1 %1242, %v714_v43  }
 0x6ec   :  { %749 = vperm.xlu1 %1242, %v715_v62  }
 0x6f0   :  { %754 = vperm.xlu1 %1242, %v716_v7  }
 0x6f4   :  { %1250 = vrot.lane.b32.xlu1 %v1249_v22, %s1322_s6 }
 0x6f8   :  { %1255 = vrot.lane.b32.xlu1 %v1244_v26, %s1323_s9 }
 0x757   :  { %v725_v2 = vpop.permute.xlu0 %724  ;;  %v720_v9 = vpop.permute.xlu1 %719 }
 0x758   :  { %v758_v45 = vmul.f32 %v725_v2, %v1516_v21  ;;  %v757_v47 = vmul.f32 %v720_v9, %v1513_v16  ;;  %v1034_v32 = vrot.slane %v725_v2, %v1029_v61  ;;  %v1030_v6 = vrot.slane %v720_v9, %v1029_v61 }
 0x75a   :  { %v772_v12 = vsel %vm156_vm1, %v758_v45, 0.0  ;;  %v765_v39 = vsel %vm156_vm1, %v757_v47, 0.0  ;;  %v1059_v26 = vsel %vm505_vm3, %v1034_v32, %v1030_v6 }
 0x75b   :  { %v1246_v8 = vpop.permute.xlu0 %1245  ;;  %v730_v15 = vpop.permute.xlu1 %729  ;;  %v773_v19 = vrot.slane %v772_v12, 4  ;;  %v766_v16 = vrot.slane %v765_v39, 4 }
 0x75c   :  { %v1248_v17 = vunpack.i.h.bf16 %v1246_v8  ;;  %v1247_v18 = vunpack.i.l.bf16 %v1246_v8  ;;  %v759_v11 = vmul.f32 %v730_v15, %v1523_v28  ;;  %v1038_v33 = vrot.slane %v730_v15, %v1029_v61 }
 0x75d   :  { %v774_v48 = vadd.f32 %v773_v19, %v772_v12  ;;  %v767_v3 = vadd.f32 %v766_v16, %v765_v39 }
 0x75e   :  { %v1219_v35 = vpack.c.bf16 %v1248_v17, %v1247_v18  ;;  %v779_v36 = vsel %vm156_vm1, %v759_v11, 0.0  ;;  %v1060_v52 = vsel %vm507_vm4, %v1038_v33, %v1059_v26 }
 0x75f   :  { %v735_v38 = vpop.permute.xlu1 %734  ;;  %v780_v49 = vrot.slane %v779_v36, 4  ;;  %v775_v4 = vrot.slane %v774_v48, 2  ;;  %v768_v10 = vrot.slane %v767_v3, 2 }
 0x760   :  { %v760_v21 = vmul.f32 %v735_v38, %v1521_v27  ;;  %1220 = vmatpush3.bf16.msra.mxu1 %v1219_v35  ;;  %v1042_v51 = vrot.slane %v735_v38, %v1029_v61 }
 0x761   :  { %1221 = vmatprep.subr.bf16.mxu1 %v1319_v0  ;;  %v781_v50 = vadd.f32 %v780_v49, %v779_v36  ;;  %v776_v14 = vadd.f32 %v775_v4, %v774_v48 }
 0x762   :  { %v786_v58 = vsel %vm156_vm1, %v760_v21, 0.0  ;;  %v1061_v44 = vsel %vm509_vm5, %v1042_v51, %v1060_v52 }
 0x763   :  { %v787_v28 = vrot.slane %v786_v58, 4  ;;  %v740_v59 = vpop.permute.xlu1 %739  ;;  %v782_v37 = vrot.slane %v781_v50, 2  ;;  %v777_v22 = vrot.slane %v776_v14, 1 }
 0x764   :  { %v761_v63 = vmul.f32 %v740_v59, %v1535_v42  ;;  %v1046_v23 = vrot.slane %v740_v59, %v1029_v61 }
 0x765   :  { %v788_v27 = vadd.f32 %v787_v28, %v786_v58  ;;  %v783_v43 = vadd.f32 %v782_v37, %v781_v50 }
 0x766   :  { %v793_v46 = vsel %vm156_vm1, %v761_v63, 0.0  ;;  %v1062_v7 = vsel %vm511_vm6, %v1046_v23, %v1061_v44 }
 0x767   :  { %v794_v5 = vrot.slane %v793_v46, 4  ;;  %v745_v24 = vpop.permute.xlu1 %744  ;;  %v789_v20 = vrot.slane %v788_v27, 2  ;;  %v784_v19 = vrot.slane %v783_v43, 1 }
 0x768   :  { %v762_v31 = vmul.f32 %v745_v24, %v1528_v34  ;;  %v1050_v29 = vrot.slane %v745_v24, %v1029_v61  ;;  %v769_v34 = vadd.f32 %v768_v10, %v767_v3 }
 0x769   :  { %v795_v13 = vadd.f32 %v794_v5, %v793_v46  ;;  %v790_v57 = vadd.f32 %v789_v20, %v788_v27  ;;  %v785_v63 = vadd.f32 %v784_v19, %v783_v43  ;;  %v857_v20 = vpop.permute.xlu0 %856  ;;  %v1086_v43 = vld [vmem:[%s1708_s0 + $0x81] ss:$0 sm:$0xff] }
 0x76a   :  { %v800_v42 = vsel %vm156_vm1, %v762_v31, 0.0  ;;  %v770_v15 = vrot.slane %v769_v34, 1 }
 0x76b   :  { %v801_v55 = vrot.slane %v800_v42, 4  ;;  %v750_v25 = vpop.permute.xlu1 %749  ;;  %v796_v41 = vrot.slane %v795_v13, 2  ;;  %v791_v36 = vrot.slane %v790_v57, 1 }
 0x76c   :  { %v763_v30 = vmul.f32 %v750_v25, %v1545_v60  ;;  %v1054_v53 = vrot.slane %v750_v25, %v1029_v61  ;;  %v1063_v60 = vsel %vm513_vm7, %v1050_v29, %v1062_v7  ;;  %v771_v58 = vadd.f32 %v770_v15, %v769_v34 }
 0x76d   :  { %v802_v56 = vadd.f32 %v801_v55, %v800_v42  ;;  %v797_v47 = vadd.f32 %v796_v41, %v795_v13  ;;  %v792_v4 = vadd.f32 %v791_v36, %v790_v57  ;;  %v1261_v55 = vpop.permute.xlu0 %1260 }
 0x76e   :  { %v807_v62 = vsel %vm156_vm1, %v763_v30, 0.0  ;;  %v1064_v11 = vsel %vm515_vm8, %v1054_v53, %v1063_v60  ;;  %v1263_v41 = vunpack.i.h.bf16 %v1261_v55  ;;  %v1262_v29 = vunpack.i.l.bf16 %v1261_v55 }
 0x76f   :  { %v803_v2 = vrot.slane %v802_v56, 2  ;;  %v808_v9 = vrot.slane %v807_v62, 4  ;;  %v755_v45 = vpop.permute.xlu1 %754  ;;  %v798_v16 = vrot.slane %v797_v47, 1 }
 0x770   :  { %v764_v12 = vmul.f32 %v755_v45, %v1540_v54  ;;  %v1058_v8 = vrot.slane %v755_v45, %v1029_v61  ;;  %v778_v54 = vadd.f32 %v777_v22, %v776_v14  ;;  %v1228_v34 = vpack.c.bf16 %v1263_v41, %v1262_v29 }
 0x771   :  { %v804_v17 = vadd.f32 %v803_v2, %v802_v56  ;;  %v809_v18 = vadd.f32 %v808_v9, %v807_v62  ;;  %v799_v27 = vadd.f32 %v798_v16, %v797_v47 }
 0x772   :  { %v814_v39 = vsel %vm156_vm1, %v764_v12, 0.0  ;;  %v1065_v35 = vsel %vm517_vm9, %v1058_v8, %v1064_v11  ;;  %v833_v5 = vsel %vm505_vm3, %v778_v54, %v771_v58 }
 0x773   :  { %v810_v38 = vrot.slane %v809_v18, 2  ;;  %v815_v40 = vrot.slane %v814_v39, 4  ;;  %v1251_v21 = vpop.permute.xlu1 %1250  ;;  %1068 = vst.msk [vmem:[%s1711_s3] sm:$0xff] %vm1067_vm11, %v1065_v35  ;;  %v805_v28 = vrot.slane %v804_v17, 1  ;;  %v834_v6 = vsel %vm507_vm4, %v785_v63, %v833_v5 }
 0x774   :  { %v1253_v48 = vunpack.i.h.bf16 %v1251_v21  ;;  %v1252_v49 = vunpack.i.l.bf16 %v1251_v21  ;;  %v835_v10 = vsel %vm509_vm5, %v792_v4, %v834_v6 }
 0x775   :  { %v811_v59 = vadd.f32 %v810_v38, %v809_v18  ;;  %v816_v61 = vadd.f32 %v815_v40, %v814_v39  ;;  %v806_v24 = vadd.f32 %v805_v28, %v804_v17  ;;  %v836_v13 = vsel %vm511_vm6, %v799_v27, %v835_v10 }
 0x776   :  { %v1222_v3 = vpack.c.bf16 %v1253_v48, %v1252_v49 }
 0x777   :  { %v812_v50 = vrot.slane %v811_v59, 1  ;;  %v817_v46 = vrot.slane %v816_v61, 2  ;;  %v837_v37 = vsel %vm513_vm7, %v806_v24, %v836_v13  ;;  %v1256_v23 = vpop.permute.xlu1 %1255 }
 0x778   :  { %1223 = vmatpush3.bf16.msra.mxu1 %v1222_v3  ;;  %v1258_v25 = vunpack.i.h.bf16 %v1256_v23  ;;  %v1257_v26 = vunpack.i.l.bf16 %v1256_v23 }
 0x779   :  { %v818_v32 = vadd.f32 %v817_v46, %v816_v61  ;;  %1224 = vmatprep.subr.bf16.mxu1 %v1319_v0  ;;  %v813_v31 = vadd.f32 %v812_v50, %v811_v59 }
 0x77a   :  { %v1225_v30 = vpack.c.bf16 %v1258_v25, %v1257_v26 }
 0x77b   :  { %v819_v33 = vrot.slane %v818_v32, 1  ;;  %v838_v51 = vsel %vm515_vm8, %v813_v31, %v837_v37 }
 0x77d   :  { %v820_v14 = vadd.f32 %v819_v33, %v818_v32 }
 0x77f   :  { %v839_v42 = vsel %vm517_vm9, %v820_v14, %v838_v51 }
 0x780   :  { %1175 = vmatmul.mubr.msk.f32.vlgmr.msra.gmra.mrb[2].mxu1 %vm156_vm1, %v839_v42 }
 0x781   :  { %1185 = vmatprep.mubr.msk.f32.mxu1 %vm1320_vm0, %v1321_v1  ;;  %1226 = vmatpush3.bf16.msra.mxu1 %v1225_v30 }
 0x782   :  { %1227 = vmatprep.subr.bf16.mxu1 %v1319_v0 }
 0x785   :  { %1229 = vmatpush3.bf16.msra.mxu1 %v1228_v34 }
 0x853   :  { %v927_v52 = vpop.f32.mrb[2].mxu1 }
 0x854   :  { %v928_v56 = vadd.f32 %v927_v52, %v857_v20  ;;  %v1176_v53 = vpop.f32.mrb[3].mxu1 }
 0x856   :  { %1290 = vtanh.f32 %v928_v56 }
 0x860   :  { %v1291_v22 = vpop.eup %1290 }
 0x861   :  { %1186 = vmatmul.mubr.msk.f32.vlgmr.msra.gmra.mrb[4].mxu1 %vm156_vm1, %v1291_v22 }
 0x934   :  { %v1018_v44 = vpop.f32.mrb[4].mxu1 }
 0x935   :  { %v1019_v62 = vadd.f32 %v1086_v43, %v1018_v44  ;;  %v1187_v57 = vpop.f32.mrb[5].mxu1 }
 0x937   :  { %1070 = vrot.lane.b32.xlu1 %v1019_v62, %s1327_s26 }
 0x9a9   :  { %v1071_v0 = vpop.permute.xlu1 %1070 }
 0x9aa   :  { %1074 = vst.msk [vmem:[%s1711_s3] sm:$0xff] %vm1073_vm12, %v1071_v0 }
 0x9ab   :  { %1076 = vst.msk [vmem:[%s1711_s3] sm:$0xff] %vm1075_vm13, %v1321_v1 }
 0x9ac   :  { %1081 = vsyncpa [#allocation3], 1 }

</bundles_post_ra>
